<compile_context>
chip_gen: v7x
topology: tpu7x:2x2x1
jax: 0.10.0
libtpu: 0.0.40
codegen_flags: <defaults>
</compile_context>

<pallas_src>
import functools
import math

import jax
import jax.numpy as jnp
from jax.experimental import pallas as pl
from jax.experimental.pallas import tpu as pltpu


def _mha_kernel(q_ref, k_ref, v_ref, bias_ref, o_ref, w_ref, *, num_heads):
    """One grid step = one batch element, all heads.

    q_ref:    (1, Lt, D)   projected queries (scale already folded in)
    k_ref:    (1, Ls, D)   projected keys
    v_ref:    (1, Ls, D)   projected values
    bias_ref: (1, Lt, Ls)  additive mask bias (0 or large negative), per batch
    o_ref:    (1, Lt, D)   attended output (heads merged, lane-dense)
    w_ref:    (1, Lt, Ls)  head-averaged attention weights
    """
    Lt, D = q_ref.shape[1], q_ref.shape[2]
    Ls = k_ref.shape[1]
    H = num_heads
    Dh = D // H

    q = q_ref[0]          # (Lt, D) f32
    k = k_ref[0]          # (Ls, D) f32
    v = v_ref[0]          # (Ls, D) f32
    bias = bias_ref[0]    # (Lt, Ls) f32

    # bf16 operands for the MXU (f32 accumulation via preferred_element_type);
    # softmax math below stays f32.
    qb = q.astype(jnp.bfloat16)
    kb = k.astype(jnp.bfloat16)
    vb = v.astype(jnp.bfloat16)

    w_sum = jnp.zeros((Lt, Ls), jnp.float32)
    o_parts = []
    # Static unroll over heads (H is small); head slices are static lane
    # slices of the lane-dense (L, D) tiles.
    for h in range(H):
        sl = slice(h * Dh, (h + 1) * Dh)
        # scores = q_h @ k_h^T  (+ mask bias shared across heads)
        s = jax.lax.dot_general(
            qb[:, sl], kb[:, sl],
            (((1,), (1,)), ((), ())),
            preferred_element_type=jnp.float32) + bias           # (Lt, Ls)

        # numerically stable f32 softmax over the source axis
        m = jnp.max(s, axis=-1, keepdims=True)
        p = jnp.exp(s - m)
        denom = jnp.sum(p, axis=-1, keepdims=True)
        w = p * pl.reciprocal(denom, approx=True)                # (Lt, Ls)

        w_sum = w_sum + w
        o_parts.append(
            jnp.dot(w.astype(jnp.bfloat16), vb[:, sl],
                    preferred_element_type=jnp.float32))          # (Lt, Dh)

    # Merge heads back into a single lane-dense (Lt, D) slab and store once.
    o_ref[0] = jnp.concatenate(o_parts, axis=-1).astype(o_ref.dtype)
    # torch default average_attn_weights=True -> mean over heads, in-kernel.
    w_ref[0] = (w_sum * (1.0 / H)).astype(w_ref.dtype)


def _pallas_attention(qp, kp, vp, bias, num_heads):
    """qp: (B, Lt, D), kp/vp: (B, Ls, D), bias: (B, Lt, Ls) -> (out, weights)."""
    B, Lt, D = qp.shape
    Ls = kp.shape[1]

    kernel = functools.partial(_mha_kernel, num_heads=num_heads)
    out, weights = pl.pallas_call(
        kernel,
        out_shape=(
            jax.ShapeDtypeStruct((B, Lt, D), jnp.float32),
            jax.ShapeDtypeStruct((B, Lt, Ls), jnp.float32),
        ),
        grid_spec=pltpu.PrefetchScalarGridSpec(
            num_scalar_prefetch=0,
            grid=(B,),
            in_specs=[
                pl.BlockSpec((1, Lt, D), lambda b: (b, 0, 0)),
                pl.BlockSpec((1, Ls, D), lambda b: (b, 0, 0)),
                pl.BlockSpec((1, Ls, D), lambda b: (b, 0, 0)),
                pl.BlockSpec((1, Lt, Ls), lambda b: (b, 0, 0)),
            ],
            out_specs=[
                pl.BlockSpec((1, Lt, D), lambda b: (b, 0, 0)),
                pl.BlockSpec((1, Lt, Ls), lambda b: (b, 0, 0)),
            ],
        ),
        compiler_params=pltpu.CompilerParams(
            dimension_semantics=("parallel",)),
    )(qp, kp, vp, bias)
    return out, weights


class MultiHeadAttnWrapperPallas:
    """JAX/Pallas re-implementation of the PyTorch MultiHeadAttnWrapper."""

    def __init__(self, dim, num_heads, key):
        assert dim % num_heads == 0
        self.dim = dim
        self.num_heads = num_heads
        self.head_dim = dim // num_heads

        k1, k2, k3, k4 = jax.random.split(key, 4)
        bound = 1.0 / math.sqrt(dim)
        # nn.MultiheadAttention parameters (deterministic synthetic init)
        self.in_proj_weight = jax.random.uniform(
            k1, (3 * dim, dim), jnp.float32, -bound, bound)
        self.in_proj_bias = jax.random.uniform(
            k2, (3 * dim,), jnp.float32, -bound, bound)
        self.out_proj_weight = jax.random.uniform(
            k3, (dim, dim), jnp.float32, -bound, bound)
        self.out_proj_bias = jax.random.uniform(
            k4, (dim,), jnp.float32, -bound, bound)

    def __call__(self, q, k, v, q_mask=None, k_mask=None):
        """
        q: (B, Lt, D), k/v: (B, Ls, D)
        q_mask: (B, Lt) or (B, Lt, 1), 1 means mask.  k_mask analogous.
        Returns (attended_q (B, Lt, D), attention_weight (B, Lt, Ls)).
        """
        B, Lt, D = q.shape
        Ls = k.shape[1]
        H = self.num_heads
        scale = 1.0 / math.sqrt(self.head_dim)

        # ---- mask construction (same `qm & km^T` semantics as the torch
        #      wrapper); bias stays per-batch (B, Lt, Ls) — no head repeat ----
        if q_mask is not None and k_mask is not None:
            qm = q_mask[..., None] if q_mask.ndim == 2 else q_mask       # (B, Lt, 1)
            km = k_mask[..., None] if k_mask.ndim == 2 else k_mask       # (B, Ls, 1)
            mask = (qm.astype(jnp.int32) &
                    jnp.swapaxes(km.astype(jnp.int32), 1, 2)).astype(bool)  # (B, Lt, Ls)
            # Large finite negative instead of -inf: identical result for
            # partially-masked rows, avoids NaN for fully-masked rows.
            bias = jnp.where(mask, -1e30, 0.0).astype(jnp.float32)
        else:
            bias = jnp.zeros((B, Lt, Ls), jnp.float32)

        # ---- input projections (XLA glue); fold 1/sqrt(head_dim) into q ----
        wq, wk, wv = jnp.split(self.in_proj_weight, 3, axis=0)
        bq, bk, bv = jnp.split(self.in_proj_bias, 3, axis=0)
        qp = q @ (wq * scale).T + bq * scale      # (B, Lt, D), pre-scaled
        kp = k @ wk.T + bk                        # (B, Ls, D)
        vp = v @ wv.T + bv                        # (B, Ls, D)

        # ---- Pallas attention core (all heads per grid step) ----
        # TODO(synk): for long sequences, add flash-style Ls tiling (online
        # softmax) and fuse the projections as a leading K-loop in the same
        # pallas_call; not needed at these shapes.
        oh, wh = _pallas_attention(qp, kp, vp, bias, H)   # (B, Lt, D), (B, Lt, Ls)

        # output projection
        attn = oh @ self.out_proj_weight.T + self.out_proj_bias
        return attn, wh


if __name__ == "__main__":
    dim, num_heads = 32, 4
    bsz, seq_t, seq_s = 2, 8, 8

    key = jax.random.PRNGKey(0)
    kq, kk, kv, kparams = jax.random.split(key, 4)
    q = jax.random.normal(kq, (bsz, seq_t, dim), jnp.float32)
    k = jax.random.normal(kk, (bsz, seq_s, dim), jnp.float32)
    v = jax.random.normal(kv, (bsz, seq_s, dim), jnp.float32)

    # masks: 1 means "mask out"; keep every row partially unmasked
    q_mask = jnp.zeros((bsz, seq_t), jnp.int32).at[:, -1].set(1)
    k_mask = jnp.zeros((bsz, seq_s), jnp.int32).at[:, -2:].set(1)

    model = MultiHeadAttnWrapperPallas(dim, num_heads, kparams)
    attended_q, attention_weight = model(q, k, v, q_mask, k_mask)
    jax.block_until_ready((attended_q, attention_weight))

    assert attended_q.shape == (bsz, seq_t, dim)
    assert attention_weight.shape == (bsz, seq_t, seq_s)
    assert bool(jnp.all(jnp.isfinite(attended_q)))
    assert bool(jnp.all(jnp.isfinite(attention_weight)))
    print("KERNEL_OK")
</pallas_src>

<mosaic_0001>
module attributes {stable_mosaic.version = 11 : i64} {
  func.func @_mha_kernel(%arg0: i32, %arg1: memref<1x8x32xf32, #tpu.memory_space<vmem>>, %arg2: memref<1x8x32xf32, #tpu.memory_space<vmem>>, %arg3: memref<1x8x32xf32, #tpu.memory_space<vmem>>, %arg4: memref<1x8x8xf32, #tpu.memory_space<vmem>>, %arg5: memref<1x8x32xf32, #tpu.memory_space<vmem>>, %arg6: memref<1x8x8xf32, #tpu.memory_space<vmem>>) attributes {dimension_semantics = [#tpu.dimension_semantics<parallel>], iteration_bounds = array<i64: 2>, scalar_prefetch = 0 : i64, scratch_operands = 0 : i64, tpu.core_type = #tpu.core_type<tc>, window_params = [{transform_indices = @transform_0, window_bounds = array<i64: 1, 8, 32>}, {transform_indices = @transform_1, window_bounds = array<i64: 1, 8, 32>}, {transform_indices = @transform_2, window_bounds = array<i64: 1, 8, 32>}, {transform_indices = @transform_3, window_bounds = array<i64: 1, 8, 8>}, {transform_indices = @transform_4, window_bounds = array<i64: 1, 8, 32>}, {transform_indices = @transform_5, window_bounds = array<i64: 1, 8, 8>}]} {
    %c0 = arith.constant 0 : index
    %c0_0 = arith.constant 0 : index
    %c0_1 = arith.constant 0 : index
    %0 = vector.load %arg1[%c0, %c0_0, %c0_1] : memref<1x8x32xf32, #tpu.memory_space<vmem>>, vector<1x8x32xf32>
    %1 = vector.shape_cast %0 : vector<1x8x32xf32> to vector<8x32xf32>
    %c0_2 = arith.constant 0 : index
    %c0_3 = arith.constant 0 : index
    %c0_4 = arith.constant 0 : index
    %2 = vector.load %arg2[%c0_2, %c0_3, %c0_4] : memref<1x8x32xf32, #tpu.memory_space<vmem>>, vector<1x8x32xf32>
    %3 = vector.shape_cast %2 : vector<1x8x32xf32> to vector<8x32xf32>
    %c0_5 = arith.constant 0 : index
    %c0_6 = arith.constant 0 : index
    %c0_7 = arith.constant 0 : index
    %4 = vector.load %arg3[%c0_5, %c0_6, %c0_7] : memref<1x8x32xf32, #tpu.memory_space<vmem>>, vector<1x8x32xf32>
    %5 = vector.shape_cast %4 : vector<1x8x32xf32> to vector<8x32xf32>
    %c0_8 = arith.constant 0 : index
    %c0_9 = arith.constant 0 : index
    %c0_10 = arith.constant 0 : index
    %6 = vector.load %arg4[%c0_8, %c0_9, %c0_10] : memref<1x8x8xf32, #tpu.memory_space<vmem>>, vector<1x8x8xf32>
    %7 = vector.shape_cast %6 : vector<1x8x8xf32> to vector<8x8xf32>
    %8 = arith.truncf %1 : vector<8x32xf32> to vector<8x32xbf16>
    %9 = arith.truncf %3 : vector<8x32xf32> to vector<8x32xbf16>
    %10 = arith.truncf %5 : vector<8x32xf32> to vector<8x32xbf16>
    %cst = arith.constant 0.000000e+00 : f32
    %11 = vector.broadcast %cst : f32 to vector<8x8xf32>
    %12 = vector.extract_strided_slice %8 {offsets = [0, 0], sizes = [8, 8], strides = [1, 1]} : vector<8x32xbf16> to vector<8x8xbf16>
    %13 = vector.extract_strided_slice %9 {offsets = [0, 0], sizes = [8, 8], strides = [1, 1]} : vector<8x32xbf16> to vector<8x8xbf16>
    %cst_11 = arith.constant dense<0.000000e+00> : vector<8x8xf32>
    %14 = tpu.matmul %12, %13, %cst_11 {dimension_numbers = #tpu.dot_dimension_numbers<[1], [1], [0], [0], [0, 0, 1, 0], [], []>} : vector<8x8xbf16>, vector<8x8xbf16>, vector<8x8xf32> -> vector<8x8xf32>
    %15 = arith.addf %14, %7 : vector<8x8xf32>
    %cst_12 = arith.constant dense<0xFF800000> : vector<8xf32>
    %16 = vector.multi_reduction <maximumf>, %15, %cst_12 [1] : vector<8x8xf32> to vector<8xf32>
    %17 = vector.shape_cast %16 : vector<8xf32> to vector<8x1xf32>
    %18 = vector.broadcast %17 : vector<8x1xf32> to vector<8x8xf32>
    %19 = arith.subf %15, %18 : vector<8x8xf32>
    %20 = math.exp %19 : vector<8x8xf32>
    %cst_13 = arith.constant dense<0.000000e+00> : vector<8xf32>
    %21 = vector.multi_reduction <add>, %20, %cst_13 [1] : vector<8x8xf32> to vector<8xf32>
    %22 = vector.shape_cast %21 : vector<8xf32> to vector<8x1xf32>
    %23 = tpu.reciprocal %22 {approx = true} : vector<8x1xf32> -> vector<8x1xf32>
    %24 = vector.broadcast %23 : vector<8x1xf32> to vector<8x8xf32>
    %25 = arith.mulf %20, %24 : vector<8x8xf32>
    %26 = arith.addf %11, %25 : vector<8x8xf32>
    %27 = arith.truncf %25 : vector<8x8xf32> to vector<8x8xbf16>
    %28 = vector.extract_strided_slice %10 {offsets = [0, 0], sizes = [8, 8], strides = [1, 1]} : vector<8x32xbf16> to vector<8x8xbf16>
    %cst_14 = arith.constant dense<0.000000e+00> : vector<8x8xf32>
    %29 = tpu.matmul %27, %28, %cst_14 {dimension_numbers = #tpu.dot_dimension_numbers<[1], [0], [0], [1], [0, 0, 1, 1], [], []>} : vector<8x8xbf16>, vector<8x8xbf16>, vector<8x8xf32> -> vector<8x8xf32>
    %30 = vector.extract_strided_slice %8 {offsets = [0, 8], sizes = [8, 8], strides = [1, 1]} : vector<8x32xbf16> to vector<8x8xbf16>
    %31 = vector.extract_strided_slice %9 {offsets = [0, 8], sizes = [8, 8], strides = [1, 1]} : vector<8x32xbf16> to vector<8x8xbf16>
    %cst_15 = arith.constant dense<0.000000e+00> : vector<8x8xf32>
    %32 = tpu.matmul %30, %31, %cst_15 {dimension_numbers = #tpu.dot_dimension_numbers<[1], [1], [0], [0], [0, 0, 1, 0], [], []>} : vector<8x8xbf16>, vector<8x8xbf16>, vector<8x8xf32> -> vector<8x8xf32>
    %33 = arith.addf %32, %7 : vector<8x8xf32>
    %cst_16 = arith.constant dense<0xFF800000> : vector<8xf32>
    %34 = vector.multi_reduction <maximumf>, %33, %cst_16 [1] : vector<8x8xf32> to vector<8xf32>
    %35 = vector.shape_cast %34 : vector<8xf32> to vector<8x1xf32>
    %36 = vector.broadcast %35 : vector<8x1xf32> to vector<8x8xf32>
    %37 = arith.subf %33, %36 : vector<8x8xf32>
    %38 = math.exp %37 : vector<8x8xf32>
    %cst_17 = arith.constant dense<0.000000e+00> : vector<8xf32>
    %39 = vector.multi_reduction <add>, %38, %cst_17 [1] : vector<8x8xf32> to vector<8xf32>
    %40 = vector.shape_cast %39 : vector<8xf32> to vector<8x1xf32>
    %41 = tpu.reciprocal %40 {approx = true} : vector<8x1xf32> -> vector<8x1xf32>
    %42 = vector.broadcast %41 : vector<8x1xf32> to vector<8x8xf32>
    %43 = arith.mulf %38, %42 : vector<8x8xf32>
    %44 = arith.addf %26, %43 : vector<8x8xf32>
    %45 = arith.truncf %43 : vector<8x8xf32> to vector<8x8xbf16>
    %46 = vector.extract_strided_slice %10 {offsets = [0, 8], sizes = [8, 8], strides = [1, 1]} : vector<8x32xbf16> to vector<8x8xbf16>
    %cst_18 = arith.constant dense<0.000000e+00> : vector<8x8xf32>
    %47 = tpu.matmul %45, %46, %cst_18 {dimension_numbers = #tpu.dot_dimension_numbers<[1], [0], [0], [1], [0, 0, 1, 1], [], []>} : vector<8x8xbf16>, vector<8x8xbf16>, vector<8x8xf32> -> vector<8x8xf32>
    %48 = vector.extract_strided_slice %8 {offsets = [0, 16], sizes = [8, 8], strides = [1, 1]} : vector<8x32xbf16> to vector<8x8xbf16>
    %49 = vector.extract_strided_slice %9 {offsets = [0, 16], sizes = [8, 8], strides = [1, 1]} : vector<8x32xbf16> to vector<8x8xbf16>
    %cst_19 = arith.constant dense<0.000000e+00> : vector<8x8xf32>
    %50 = tpu.matmul %48, %49, %cst_19 {dimension_numbers = #tpu.dot_dimension_numbers<[1], [1], [0], [0], [0, 0, 1, 0], [], []>} : vector<8x8xbf16>, vector<8x8xbf16>, vector<8x8xf32> -> vector<8x8xf32>
    %51 = arith.addf %50, %7 : vector<8x8xf32>
    %cst_20 = arith.constant dense<0xFF800000> : vector<8xf32>
    %52 = vector.multi_reduction <maximumf>, %51, %cst_20 [1] : vector<8x8xf32> to vector<8xf32>
    %53 = vector.shape_cast %52 : vector<8xf32> to vector<8x1xf32>
    %54 = vector.broadcast %53 : vector<8x1xf32> to vector<8x8xf32>
    %55 = arith.subf %51, %54 : vector<8x8xf32>
    %56 = math.exp %55 : vector<8x8xf32>
    %cst_21 = arith.constant dense<0.000000e+00> : vector<8xf32>
    %57 = vector.multi_reduction <add>, %56, %cst_21 [1] : vector<8x8xf32> to vector<8xf32>
    %58 = vector.shape_cast %57 : vector<8xf32> to vector<8x1xf32>
    %59 = tpu.reciprocal %58 {approx = true} : vector<8x1xf32> -> vector<8x1xf32>
    %60 = vector.broadcast %59 : vector<8x1xf32> to vector<8x8xf32>
    %61 = arith.mulf %56, %60 : vector<8x8xf32>
    %62 = arith.addf %44, %61 : vector<8x8xf32>
    %63 = arith.truncf %61 : vector<8x8xf32> to vector<8x8xbf16>
    %64 = vector.extract_strided_slice %10 {offsets = [0, 16], sizes = [8, 8], strides = [1, 1]} : vector<8x32xbf16> to vector<8x8xbf16>
    %cst_22 = arith.constant dense<0.000000e+00> : vector<8x8xf32>
    %65 = tpu.matmul %63, %64, %cst_22 {dimension_numbers = #tpu.dot_dimension_numbers<[1], [0], [0], [1], [0, 0, 1, 1], [], []>} : vector<8x8xbf16>, vector<8x8xbf16>, vector<8x8xf32> -> vector<8x8xf32>
    %66 = vector.extract_strided_slice %8 {offsets = [0, 24], sizes = [8, 8], strides = [1, 1]} : vector<8x32xbf16> to vector<8x8xbf16>
    %67 = vector.extract_strided_slice %9 {offsets = [0, 24], sizes = [8, 8], strides = [1, 1]} : vector<8x32xbf16> to vector<8x8xbf16>
    %cst_23 = arith.constant dense<0.000000e+00> : vector<8x8xf32>
    %68 = tpu.matmul %66, %67, %cst_23 {dimension_numbers = #tpu.dot_dimension_numbers<[1], [1], [0], [0], [0, 0, 1, 0], [], []>} : vector<8x8xbf16>, vector<8x8xbf16>, vector<8x8xf32> -> vector<8x8xf32>
    %69 = arith.addf %68, %7 : vector<8x8xf32>
    %cst_24 = arith.constant dense<0xFF800000> : vector<8xf32>
    %70 = vector.multi_reduction <maximumf>, %69, %cst_24 [1] : vector<8x8xf32> to vector<8xf32>
    %71 = vector.shape_cast %70 : vector<8xf32> to vector<8x1xf32>
    %72 = vector.broadcast %71 : vector<8x1xf32> to vector<8x8xf32>
    %73 = arith.subf %69, %72 : vector<8x8xf32>
    %74 = math.exp %73 : vector<8x8xf32>
    %cst_25 = arith.constant dense<0.000000e+00> : vector<8xf32>
    %75 = vector.multi_reduction <add>, %74, %cst_25 [1] : vector<8x8xf32> to vector<8xf32>
    %76 = vector.shape_cast %75 : vector<8xf32> to vector<8x1xf32>
    %77 = tpu.reciprocal %76 {approx = true} : vector<8x1xf32> -> vector<8x1xf32>
    %78 = vector.broadcast %77 : vector<8x1xf32> to vector<8x8xf32>
    %79 = arith.mulf %74, %78 : vector<8x8xf32>
    %80 = arith.addf %62, %79 : vector<8x8xf32>
    %81 = arith.truncf %79 : vector<8x8xf32> to vector<8x8xbf16>
    %82 = vector.extract_strided_slice %10 {offsets = [0, 24], sizes = [8, 8], strides = [1, 1]} : vector<8x32xbf16> to vector<8x8xbf16>
    %cst_26 = arith.constant dense<0.000000e+00> : vector<8x8xf32>
    %83 = tpu.matmul %81, %82, %cst_26 {dimension_numbers = #tpu.dot_dimension_numbers<[1], [0], [0], [1], [0, 0, 1, 1], [], []>} : vector<8x8xbf16>, vector<8x8xbf16>, vector<8x8xf32> -> vector<8x8xf32>
    %84 = tpu.concatenate %29, %47, %65, %83 in 1 : vector<8x8xf32>, vector<8x8xf32>, vector<8x8xf32>, vector<8x8xf32> -> vector<8x32xf32>
    %c0_27 = arith.constant 0 : index
    %c0_28 = arith.constant 0 : index
    %c0_29 = arith.constant 0 : index
    %85 = vector.load %arg5[%c0_27, %c0_28, %c0_29] : memref<1x8x32xf32, #tpu.memory_space<vmem>>, vector<1x8x32xf32>
    %86 = vector.shape_cast %85 : vector<1x8x32xf32> to vector<8x32xf32>
    %87 = vector.shape_cast %84 : vector<8x32xf32> to vector<1x8x32xf32>
    tpu.vector_store %arg5[%c0_27, %c0_28, %c0_29], %87 {strides = array<i32>} : memref<1x8x32xf32, #tpu.memory_space<vmem>>, vector<1x8x32xf32>,
    %cst_30 = arith.constant 2.500000e-01 : f32
    %88 = vector.broadcast %cst_30 : f32 to vector<8x8xf32>
    %89 = arith.mulf %80, %88 : vector<8x8xf32>
    %c0_31 = arith.constant 0 : index
    %c0_32 = arith.constant 0 : index
    %c0_33 = arith.constant 0 : index
    %90 = vector.load %arg6[%c0_31, %c0_32, %c0_33] : memref<1x8x8xf32, #tpu.memory_space<vmem>>, vector<1x8x8xf32>
    %91 = vector.shape_cast %90 : vector<1x8x8xf32> to vector<8x8xf32>
    %92 = vector.shape_cast %89 : vector<8x8xf32> to vector<1x8x8xf32>
    tpu.vector_store %arg6[%c0_31, %c0_32, %c0_33], %92 {strides = array<i32>} : memref<1x8x8xf32, #tpu.memory_space<vmem>>, vector<1x8x8xf32>,
    return
  }
  func.func @transform_0(%arg0: i32) -> (i32, i32, i32) {
    %c0_i32 = arith.constant 0 : i32
    %c0_i32_0 = arith.constant 0 : i32
    %c0_i32_1 = arith.constant 0 : i32
    return %arg0, %c0_i32, %c0_i32_0 : i32, i32, i32
  }
  func.func @transform_1(%arg0: i32) -> (i32, i32, i32) {
    %c0_i32 = arith.constant 0 : i32
    %c0_i32_0 = arith.constant 0 : i32
    %c0_i32_1 = arith.constant 0 : i32
    return %arg0, %c0_i32, %c0_i32_0 : i32, i32, i32
  }
  func.func @transform_2(%arg0: i32) -> (i32, i32, i32) {
    %c0_i32 = arith.constant 0 : i32
    %c0_i32_0 = arith.constant 0 : i32
    %c0_i32_1 = arith.constant 0 : i32
    return %arg0, %c0_i32, %c0_i32_0 : i32, i32, i32
  }
  func.func @transform_3(%arg0: i32) -> (i32, i32, i32) {
    %c0_i32 = arith.constant 0 : i32
    %c0_i32_0 = arith.constant 0 : i32
    %c0_i32_1 = arith.constant 0 : i32
    return %arg0, %c0_i32, %c0_i32_0 : i32, i32, i32
  }
  func.func @transform_4(%arg0: i32) -> (i32, i32, i32) {
    %c0_i32 = arith.constant 0 : i32
    %c0_i32_0 = arith.constant 0 : i32
    %c0_i32_1 = arith.constant 0 : i32
    return %arg0, %c0_i32, %c0_i32_0 : i32, i32, i32
  }
  func.func @transform_5(%arg0: i32) -> (i32, i32, i32) {
    %c0_i32 = arith.constant 0 : i32
    %c0_i32_0 = arith.constant 0 : i32
    %c0_i32_1 = arith.constant 0 : i32
    return %arg0, %c0_i32, %c0_i32_0 : i32, i32, i32
  }
}

</mosaic_0001>

<bundles_post_ra>
// kernel: tpu_custom_call.1
= control target key start
LH: loop header
LB: loop body
LE: loop exit
PB: predicated region body
PF: predicated region fallthrough
CT: control target
= control target key end

     0   :  { %s1864_s0 = inlined_call_operand.hbm [shape: f32[2,8,32], index: 0, kind: input, shape index: {}]   ;;  %s1865_s1 = inlined_call_operand.hbm [shape: f32[2,8,32], index: 1, kind: input, shape index: {}]   ;;  %s1866_s2 = inlined_call_operand.hbm [shape: f32[2,8,32], index: 2, kind: input, shape index: {}]   ;;  %s1867_s3 = inlined_call_operand.hbm [shape: f32[2,8,8], index: 3, kind: input, shape index: {}]   ;;  %s1868_s4 = inlined_call_operand.hbm [shape: f32[2,8,32], index: 4, kind: output, shape index: {0}]   ;;  %s1869_s5 = inlined_call_operand.hbm [shape: f32[2,8,8], index: 5, kind: output, shape index: {1}]  }
   0x1   :  { %1877 = sst [smem:[#allocation21_spill]] %s1865_s1 }
   0x2   :  { %11 = vsyncpa [#allocation3], 0 }
   0x3   :  { %13 = vsyncpa [#allocation3 + $0x1], 0 }
   0x4   :  { %14 = vsyncpa [#allocation6], 0 }
   0x5   :  { %16 = vsyncpa [#allocation6 + $0x1], 0 }
   0x6   :  { %17 = vsyncpa [#allocation9], 0 }
   0x7   :  { %19 = vsyncpa [#allocation9 + $0x1], 0 }
   0x8   :  { %20 = vsyncpa [#allocation4], 0 }
   0x9   :  { %22 = vsyncpa [#allocation4 + $0x1], 0 }
   0xa   :  { %23 = vsyncpa [#allocation12], 0 }
   0xb   :  { %25 = vsyncpa [#allocation12 + $0x1], 0  ;;  %s1489_s18 = smov 0   ;;  %s1491_s19 = smov 0  }
   0xc   :  { %s1493_s20 = smov 0   ;;  %s1495_s21 = smov 0  }
   0xd LB: > { %1878 = sst [smem:[#allocation18_spill]] %s1439_s20  ;;  %s1510_s22 = sadd.s32 4294967295, %s1443_s21   ;;  %s1443_s21 = sphi %s1495_s21, %s1897_s21   ;;  %s1439_s20 = sphi %s1493_s20, %s1899_s20   ;;  %s1435_s19 = sphi %s1491_s19, %s1901_s19   ;;  %s1431_s18 = sphi %s1489_s18, %s1900_s18  }
   0xe   : > { %s1031_s23 = sadd.s32 4294967294, %s1443_s21   ;;  %s1514_s24 = sadd.s32 1, %s1443_s21  }
   0xf   : > { %1879 = sst [smem:[#allocation19_spill]] %s1514_s24  ;;  %s38_s25 = sadd.s32 1, %s1439_s20 }
  0x10   : > { %s35_s26 = ssub.s32 %s1443_s21, %s1514_s24  ;;  %p45_p0 = scmp.ne.s32.totalorder %s1439_s20, %s1435_s19 }
  0x11   : > { %p36_p1 = scmp.eq.s32.totalorder %s35_s26, 0  ;;  %p46_p2 = scmp.eq.s32.totalorder %s1443_s21, 0 }
  0x12   : > { %p51_p3 = scmp.ne.s32.totalorder %s1435_s19, %s1431_s18  ;;  %p52_p4 = scmp.eq.s32.totalorder %s1510_s22, 0 }
  0x13   : > { %s1526_s27 = scalar_select %p36_p1, %s1439_s20, %s38_s25  }
  0x14   : > { %p47_p5 = por %p46_p2, %p45_p0  ;;  %p1528_p6 = por %p52_p4, %p51_p3 }
  0x15   : > { %1880 = sst [smem:[#allocation20_spill]] %s1526_s27  ;;  %p153_p7 = scmp.eq.s32.totalorder %s1510_s22, 1 }
  0x16   : > { %s1881_s28 = scalar_select %p1528_p6, 1, 0 }
  0x17   : > { %p159_p8 = scmp.eq.s32.totalorder %s1031_s23, 1  ;;  %p1159_p10 = scmp.lt.s32.totalorder %s1443_s21, 2 }
  0x18   : > { %p1535_p11 = por %p153_p7, %p45_p0  ;;  %s1544_s6 = sand.u32 1, %s1439_s20  }
  0x19   : > { %p1539_p12 = por %p159_p8, %p51_p3  ;;  %s1547_s7 = sshll.u32 %s1443_s21, 7 }
  0x1a   : > { %s1882_s29 = scalar_select %p1535_p11, 1, 0 }
  0x1b   : > { %s1883_s30 = scalar_select %p1539_p12, 1, 0 }
  0x1c   : > { %s1550_s8 = sshll.u32 %s1544_s6, 3  ;;  %p1552_p13 = pnand %p1159_p10, %p47_p5 }
  0x1d   : > { %s223_s10 = sand.u32 1, %s1443_s21   ;;  %s1885_s1 = sld [smem:[#allocation21_spill]] }
  0x1e   : > { %s1884_s9 = scalar_select %p1552_p13, 1, 0 }
  0x1f   : > { %s227_s14 = scalar_lea.vmem [#allocation5], %s1550_s8  ;;  %s1567_s16 = scalar_lea.sflag [#allocation6], %s223_s10 }
  0x20   : > { %s234_s15 = sshll.u32 %s227_s14, 4  ;;  %p1573_p2 = pneg %p1552_p13  ;;  %s1564_s15 = int_to_ptr.vmem [resolvable:$true] %s234_s15 }
  0x23   : > { %s1561_s13 = scalar_lea.hbm %s1885_s1, %s1547_s7  ;;  %s1222_s11 = scalar_lea.hbm %s1885_s1, 256 }
  0x24   : > { %s1217_s17 = scalar_lea.hbm %s1561_s13, 128  ;;  %p1223_p5 = scmp.lt.u32.totalorder %s1561_s13, %s1885_s1 }
  0x25   : > { %p1218_p1 = scmp.ne.s32.totalorder %s1561_s13, %s1217_s17  ;;  %p1224_p7 = scmp.lt.u32.totalorder %s1222_s11, %s1217_s17 }
  0x26   : > { %p1226_p10 = scmp.lt.u32.totalorder %s1217_s17, %s1561_s13 }
  0x27   : > { %p1220_p3 = pnand %p1573_p2, %p1218_p1  ;;  %p1225_p8 = por %p1224_p7, %p1223_p5 }
  0x29   : > { %p1221_p4 = pneg %p1220_p3  ;;  %p1227_p9 = por %p1226_p10, %p1225_p8 }
  0x2b   : > { %p1228_p0 = pnand %p1227_p9, %p1221_p4 }
  0x2d   : > { %1231 = shalt.err (!%p1228_p0)
}
  0x2e   : > { %s1232_s10 = scalar_lea.vmem %s1564_s15, 128  ;;  %s1445_s25 = smov [#allocation5]  }
  0x2f   : > { %p1233_p1 = scmp.ne.s32.totalorder %s1564_s15, %s1232_s10  ;;  %s1237_s26 = sshll.u32 %s1445_s25, 4  ;;  %s1238_s26 = int_to_ptr.vmem [resolvable:$false] %s1237_s26 }
  0x30   : > { %s1239_s12 = scalar_lea.vmem %s1238_s26, 256  ;;  %p1240_p11 = scmp.lt.s32.totalorder %s1564_s15, %s1238_s26 }
  0x31   : > { %p1235_p3 = pnand %p1233_p1, %p1573_p2  ;;  %p1241_p6 = scmp.lt.s32.totalorder %s1239_s12, %s1232_s10 }
  0x33   : > { %p1236_p12 = pneg %p1235_p3  ;;  %p1242_p5 = por %p1241_p6, %p1240_p11 }
  0x35   : > { %p1243_p7 = pnand %p1242_p5, %p1236_p12 }
  0x37   : > { %1246 = shalt.err (!%p1243_p7)
}
  0x38   : > { %1145 = dma.hbm_to_vmem [thread:$0]  (!%p1552_p13), %s1561_s13, 128, %s1564_s15, %s1567_s16  }
  0x39   : > { %p275_p9 = scmp.lt.s32.totalorder %s1443_s21, 3  ;;  %s1602_s14 = scalar_lea.hbm %s1864_s0, %s1547_s7 }
  0x3a   : > { %p1887_p6 = scmp.ge.s32.totalorder %s1443_s21, 1  ;;  %s209_s25 = scalar_lea.vmem [#allocation2], %s1550_s8 }
  0x3b   : > { %s216_s26 = sshll.u32 %s209_s25, 4  ;;  %s206_s12 = scalar_lea.sflag [#allocation3], %s1544_s6  ;;  %s217_s26 = int_to_ptr.vmem [resolvable:$true] %s216_s26 }
  0x3c   : > { %p1606_p11 = pnand %p1887_p6, %p275_p9  ;;  %s1247_s13 = scalar_lea.hbm %s1602_s14, 128 }
  0x3d   : > { %p1248_p12 = scmp.ne.s32.totalorder %s1602_s14, %s1247_s13  ;;  %s1252_s11 = scalar_lea.hbm %s1864_s0, 256 }
  0x3e   : > { %s1888_s10 = scalar_select %p1606_p11, 1, 0 }
  0x3f   : > { %p1250_p0 = pnand %p1248_p12, %p1573_p2  ;;  %p1253_p8 = scmp.lt.u32.totalorder %s1602_s14, %s1864_s0 }
  0x40   : > { %p1254_p10 = scmp.lt.u32.totalorder %s1252_s11, %s1247_s13  ;;  %p1256_p3 = scmp.lt.u32.totalorder %s1247_s13, %s1602_s14 }
  0x41   : > { %p1251_p4 = pneg %p1250_p0 }
  0x42   : > { %p1255_p1 = por %p1254_p10, %p1253_p8 }
  0x44   : > { %p1257_p5 = por %p1256_p3, %p1255_p1 }
  0x46   : > { %p1258_p7 = pnand %p1257_p5, %p1251_p4 }
  0x48   : > { %1261 = shalt.err (!%p1258_p7)
}
  0x49   : > { %s1262_s25 = scalar_lea.vmem %s217_s26, 128  ;;  %s1446_s20 = smov [#allocation2]  }
  0x4a   : > { %p1263_p9 = scmp.ne.s32.totalorder %s217_s26, %s1262_s25  ;;  %s1267_s24 = sshll.u32 %s1446_s20, 4  ;;  %s1268_s24 = int_to_ptr.vmem [resolvable:$false] %s1267_s24 }
  0x4b   : > { %s1269_s15 = scalar_lea.vmem %s1268_s24, 256  ;;  %p1270_p0 = scmp.lt.s32.totalorder %s217_s26, %s1268_s24 }
  0x4c   : > { %p1265_p6 = pnand %p1263_p9, %p1573_p2  ;;  %p1271_p11 = scmp.lt.s32.totalorder %s1269_s15, %s1262_s25 }
  0x4e   : > { %p1266_p12 = pneg %p1265_p6  ;;  %p1272_p13 = por %p1271_p11, %p1270_p0 }
  0x50   : > { %p1273_p8 = pnand %p1272_p13, %p1266_p12 }
  0x52   : > { %1276 = shalt.err (!%p1273_p8)
}
  0x53   : > { %p1889_p10 = scmp.ne.s32.totalorder %s1884_s9, 0  ;;  %s1633_s13 = scalar_lea.hbm %s1866_s2, %s1547_s7 }
  0x54   : > { %s245_s20 = scalar_lea.vmem [#allocation7], %s1550_s8  ;;  %s1277_s17 = scalar_lea.hbm %s1633_s13, 128 }
  0x55   : > { %1142 = dma.hbm_to_vmem [thread:$0]  (!%p1889_p10), %s1602_s14, 128, %s217_s26, %s206_s12  }
  0x56   : > { %s252_s24 = sshll.u32 %s245_s20, 4  ;;  %p1278_p13 = scmp.ne.s32.totalorder %s1633_s13, %s1277_s17  ;;  %s253_s24 = int_to_ptr.vmem [resolvable:$true] %s252_s24 }
  0x57   : > { %s1282_s14 = scalar_lea.hbm %s1866_s2, 256  ;;  %p1283_p1 = scmp.lt.u32.totalorder %s1633_s13, %s1866_s2 }
  0x58   : > { %p1280_p11 = pnand %p1278_p13, %p1573_p2  ;;  %p1284_p3 = scmp.lt.u32.totalorder %s1282_s14, %s1277_s17 }
  0x59   : > { %p1286_p7 = scmp.lt.u32.totalorder %s1277_s17, %s1633_s13 }
  0x5a   : > { %p1281_p4 = pneg %p1280_p11  ;;  %p1285_p5 = por %p1284_p3, %p1283_p1 }
  0x5c   : > { %p1287_p9 = por %p1286_p7, %p1285_p5 }
  0x5e   : > { %p1288_p6 = pnand %p1287_p9, %p1281_p4 }
  0x60   : > { %1291 = shalt.err (!%p1288_p6)
}
  0x61   : > { %s1292_s15 = scalar_lea.vmem %s253_s24, 128  ;;  %s1447_s1 = smov [#allocation7]  }
  0x62   : > { %p1293_p12 = scmp.ne.s32.totalorder %s253_s24, %s1292_s15  ;;  %s1297_s27 = sshll.u32 %s1447_s1, 4  ;;  %s1298_s27 = int_to_ptr.vmem [resolvable:$false] %s1297_s27 }
  0x63   : > { %s1299_s20 = scalar_lea.vmem %s1298_s27, 256  ;;  %p1300_p13 = scmp.lt.s32.totalorder %s253_s24, %s1298_s27 }
  0x64   : > { %p1295_p0 = pnand %p1293_p12, %p1573_p2  ;;  %p1301_p11 = scmp.lt.s32.totalorder %s1299_s20, %s1292_s15 }
  0x66   : > { %p1296_p8 = pneg %p1295_p0  ;;  %p1302_p10 = por %p1301_p11, %p1300_p13 }
  0x68   : > { %p1303_p1 = pnand %p1302_p10, %p1296_p8 }
  0x6a   : > { %1306 = shalt.err (!%p1303_p1)
}
  0x6b   : > { %p1890_p3 = scmp.ne.s32.totalorder %s1884_s9, 0  ;;  %s1658_s25 = scalar_lea.hbm %s1867_s3, %s1547_s7 }
  0x6c   : > { %s263_s14 = scalar_lea.vmem [#allocation8], %s1550_s8  ;;  %s260_s12 = scalar_lea.sflag [#allocation9], %s1544_s6 }
  0x6d   : > { %1148 = dma.hbm_to_vmem [thread:$0]  (!%p1890_p3), %s1633_s13, 128, %s253_s24, %s1567_s16  }
  0x6e   : > { %s270_s26 = sshll.u32 %s263_s14, 4  ;;  %s1307_s15 = scalar_lea.hbm %s1658_s25, 128  ;;  %s271_s26 = int_to_ptr.vmem [resolvable:$true] %s270_s26 }
  0x6f   : > { %p1308_p10 = scmp.ne.s32.totalorder %s1658_s25, %s1307_s15  ;;  %s1312_s13 = scalar_lea.hbm %s1867_s3, 256 }
  0x70   : > { %p1313_p7 = scmp.lt.u32.totalorder %s1658_s25, %s1867_s3  ;;  %p1314_p9 = scmp.lt.u32.totalorder %s1312_s13, %s1307_s15 }
  0x71   : > { %p1310_p4 = pnand %p1308_p10, %p1573_p2  ;;  %p1316_p12 = scmp.lt.u32.totalorder %s1307_s15, %s1658_s25 }
  0x72   : > { %p1315_p6 = por %p1314_p9, %p1313_p7 }
  0x73   : > { %p1311_p5 = pneg %p1310_p4 }
  0x74   : > { %p1317_p0 = por %p1316_p12, %p1315_p6 }
  0x76   : > { %p1318_p8 = pnand %p1317_p0, %p1311_p5 }
  0x78   : > { %1321 = shalt.err (!%p1318_p8)
}
  0x79   : > { %s1322_s6 = scalar_lea.vmem %s271_s26, 128  ;;  %s1448_s8 = smov [#allocation8]  }
  0x7a   : > { %p1323_p13 = scmp.ne.s32.totalorder %s271_s26, %s1322_s6  ;;  %s1327_s27 = sshll.u32 %s1448_s8, 4  ;;  %s1328_s27 = int_to_ptr.vmem [resolvable:$false] %s1327_s27 }
  0x7b   : > { %s1329_s20 = scalar_lea.vmem %s1328_s27, 256  ;;  %p1330_p10 = scmp.lt.s32.totalorder %s271_s26, %s1328_s27 }
  0x7c   : > { %p1325_p11 = pnand %p1323_p13, %p1573_p2  ;;  %p1331_p4 = scmp.lt.s32.totalorder %s1329_s20, %s1322_s6 }
  0x7e   : > { %p1326_p1 = pneg %p1325_p11  ;;  %p1332_p3 = por %p1331_p4, %p1330_p10 }
  0x80   : > { %p1333_p7 = pnand %p1332_p3, %p1326_p1 }
  0x82   : > { %1336 = shalt.err (!%p1333_p7)
}
  0x83   : > { %p1891_p9 = scmp.ne.s32.totalorder %s1884_s9, 0  ;;  %p1892_p5 = scmp.ne.s32.totalorder %s1888_s10, 0 }
  0x84   : > { %s1682_s23 = sand.u32 (!%p1892_p5), 1, %s1435_s19   ;;  %p1893_p2 = scmp.ne.s32.totalorder (!%p1892_p5), %s1881_s28, 0 }
  0x85   : > { %1151 = dma.hbm_to_vmem [thread:$0]  (!%p1891_p9), %s1658_s25, 128, %s271_s26, %s260_s12  }
  0x86   : > { %279 = sbr.rel (%p1892_p5) target bundleno = 1622 (0x656), region = 36  ;;  %s1685_s17 = sshll.u32 (!%p1892_p5), %s1682_s23, 3 }
  0x87   : > { %s282_s11 = scalar_lea.sflag (!%p1892_p5), [#allocation3], %s1682_s23  ;;  %s285_s14 = scalar_lea.vmem (!%p1892_p5), [#allocation2], %s1685_s17 }
  0x8d   : > { %1410 = dma.done.wait (%p1893_p2), %s282_s11, 128  }
  0x8e   : > { %1412 = vsyncadd (%p1893_p2), %s282_s11, 4294967168  ;;  %s290_s9 = sand.u32 1, %s1510_s22   ;;  %s294_s25 = scalar_lea.vmem [#allocation5], %s1685_s17 }
  0x8f   : > { %s291_s10 = scalar_lea.sflag [#allocation6], %s290_s9 }
  0x90   : > { %1414 = dma.done.wait (%p1893_p2), %s291_s10, 256  }
  0x91   : > { %1416 = vsyncadd (%p1893_p2), %s291_s10, 4294967040  ;;  %s303_s26 = scalar_lea.vmem [#allocation7], %s1685_s17  ;;  %s309_s12 = scalar_lea.sflag [#allocation9], %s1682_s23 }
  0x92   : > { %s312_s15 = scalar_lea.vmem [#allocation8], %s1685_s17 }
  0x93   : > { %1418 = dma.done.wait (%p1893_p2), %s309_s12, 128  }
  0x94   : > { %1420 = vsyncadd (%p1893_p2), %s309_s12, 4294967168  ;;  %v1449_v0 = vmov 0.0   ;;  %vm1450_vm0 = vmmov 0   ;;  %v361_v1 = vld [vmem:[%s294_s25] sm:$0xff]  ;;  %vm367_vm1 = vcmask 64512   ;;  %v360_v4 = vld [vmem:[%s285_s14] sm:$0xff] }
  0x95   : > { %1079 = vmatprep.subr.bf16.mxu0 %v1449_v0  ;;  %1081 = vmatprep.mubr.msk.bf16.mxu0 %vm1450_vm0, %v1449_v0  ;;  %v365_v2 = vpack.c.bf16 %v361_v1, %v361_v1  ;;  %v364_v5 = vpack.c.bf16 %v360_v4, %v360_v4  ;;  %v1717_v6 = vld [vmem:[%s312_s15] sm:$0xff]  ;;  %s1451_s28 = smov 120   ;;  %s1452_s1 = smov 112   ;;  %v362_v18 = vld [vmem:[%s303_s26] sm:$0xff]  ;;  %vm430_vm2 = vcmask 1043456  }
  0x96   : > { %1085 = vmatprep.subr.bf16.mxu1 %v1449_v0  ;;  %1087 = vmatprep.mubr.msk.bf16.mxu1 %vm1450_vm0, %v1449_v0  ;;  %s1453_s16 = smov 104   ;;  %v1729_v19 = vpack.c.bf16 %v362_v18, %v362_v18  ;;  %s358_s13 = scalar_lea.vmem [#allocation11], %s1685_s17 }
  0x97   : > { %v372_v3 = vsel %vm367_vm1, %v365_v2, 0  ;;  %478 = vrot.lane.b32.xlu1 %v365_v2, %s1451_s28  ;;  %s1454_s24 = smov 8   ;;  %s1455_s7 = smov 16  }
  0x98   : > { %1080 = vmatpush3.bf16.xpose.msra.mxu0 %v372_v3  ;;  %v432_v20 = vsel %vm430_vm2, %v1729_v19, 0  ;;  %s1059_s6 = sshll.u32 %s1510_s22, 7  ;;  %s863_s11 = sshll.u32 %s358_s13, 4  ;;  %s864_s11 = int_to_ptr.vmem [resolvable:$true] %s863_s11 }
  0x99   : > { %1097 = vmatprep.subr.bf16.mxu0 %v1449_v0  ;;  %1086 = vmatpush3.bf16.msra.mxu1 %v432_v20  ;;  %s1792_s20 = scalar_lea.hbm %s1869_s5, %s1059_s6  ;;  %s837_s14 = scalar_lea.sflag [#allocation12], %s1682_s23 }
  0x9a   : > { %1091 = vmatprep.subr.bf16.mxu1 %v1449_v0  ;;  %s1337_s9 = scalar_lea.vmem %s864_s11, 128  ;;  %p1894_p6 = scmp.ne.s32.totalorder %s1882_s29, 0 }
  0x9b   : > { %475 = vrot.lane.b32.xlu1 %v364_v5, %s1451_s28  ;;  %p1338_p3 = scmp.ne.s32.totalorder %s864_s11, %s1337_s9  ;;  %s1456_s10 = smov [#allocation11]  }
  0x9c   : > { %s1341_s25 = sshll.u32 %s1456_s10, 4  ;;  %s1342_s25 = int_to_ptr.vmem [resolvable:$false] %s1341_s25 }
  0x9d   : > { %p1339_p12 = pnand %p1338_p3, %p1894_p6  ;;  %s1343_s26 = scalar_lea.vmem %s1342_s25, 256 }
  0x9e   : > { %p1344_p8 = scmp.lt.s32.totalorder %s864_s11, %s1342_s25  ;;  %p1345_p13 = scmp.lt.s32.totalorder %s1343_s26, %s1337_s9 }
  0x9f   : > { %1082 = vmatmul.mubr.msk.bf16.vlgmr.msra.gmra.mrb[0].mxu0 %vm367_vm1, %v364_v5  ;;  %588 = vrot.lane.b32.xlu1 %v364_v5, %s1452_s1  ;;  %p1340_p0 = pneg %p1339_p12 }
  0xa0   : > { %1099 = vmatprep.mubr.msk.bf16.mxu0 %vm1450_vm0, %v1449_v0  ;;  %p1346_p11 = por %p1345_p13, %p1344_p8 }
  0xa2   : > { %p1347_p1 = pnand %p1346_p11, %p1340_p0 }
  0xa3   : > { %701 = vrot.lane.b32.xlu1 %v365_v2, %s1453_s16 }
  0xa7   : > { %699 = vrot.lane.b32.xlu1 %v364_v5, %s1453_s16 }
 0x109   : > { %v479_v23 = vpop.permute.xlu1 %478 }
 0x10a   : > { %v484_v25 = vsel %vm367_vm1, %v479_v23, 0 }
 0x10d   : > { %v476_v27 = vpop.permute.xlu1 %475 }
 0x111   : > { %v589_v29 = vpop.permute.xlu1 %588 }
 0x115   : > { %v702_v31 = vpop.permute.xlu1 %701 }
 0x116   : > { %v707_v32 = vsel %vm367_vm1, %v702_v31, 0 }
 0x119   : > { %v700_v33 = vpop.permute.xlu1 %699 }
 0x172   : > { %v408_v7 = vpop.f32.mrb[0].mxu0 }
 0x173   : > { %v409_v8 = vadd.f32 %v408_v7, %v1717_v6  ;;  %v1083_v9 = vpop.f32.mrb[1].mxu0 }
 0x174   : > { %v411_v10 = vpop.f32.mrb[2].mxu0 }
 0x175   : > { %v1084_v11 = vpop.f32.mrb[3].mxu0  ;;  %v414_v12 = vsel %vm367_vm1, %v409_v8, -inf }
 0x176   : > { %415 = vmax.xlane.f32.xlu0 %v414_v12 }
 0x203   : > { %v416_v13 = vpop.xlane.xlu0 %415 }
 0x204   : > { %v417_v14 = vsub.f32 %v409_v8, %v416_v13 }
 0x206   : > { %v418_v15 = vmul.f32 1.442695, %v417_v14 }
 0x208   : > { %1201 = vpow2.f32 %v418_v15 }
 0x212   : > { %v1202_v16 = vpop.eup %1201 }
 0x213   : > { %v420_v17 = vsel %vm367_vm1, %v1202_v16, 0.0 }
 0x214   : > { %421 = vadd.xlane.f32.xlu0 %v420_v17 }
 0x22a   : > { %590 = vrot.lane.b32.xlu0 %v365_v2, %s1452_s1 }
 0x2a1   : > { %v422_v21 = vpop.xlane.xlu0 %421 }
 0x2a2   : > { %1203 = vrcp.f32 %v422_v21 }
 0x2a5   : > { %v591_v28 = vpop.permute.xlu0 %590 }
 0x2a6   : > { %v596_v30 = vsel %vm367_vm1, %v591_v28, 0 }
 0x2ac   : > { %v1204_v22 = vpop.eup %1203 }
 0x2ad   : > { %v1735_v24 = vmul.f32 %v1204_v22, %v1202_v16 }
 0x2af   : > { %v426_v26 = vpack.c.bf16 %v1735_v24, %v1735_v24 }
 0x2b1   : > { %1088 = vmatmul.mubr.msk.bf16.vlgmr.msra.gmra.mrb[0].mxu1 %vm367_vm1, %v426_v26 }
 0x2b2   : > { %1092 = vmatpush3.bf16.xpose.msra.mxu1 %v484_v25  ;;  %1093 = vmatprep.mubr.msk.bf16.mxu1 %vm1450_vm0, %v1449_v0 }
 0x2b3   : > { %1103 = vmatprep.subr.bf16.mxu1 %v1449_v0 }
 0x2b9   : > { %1094 = vmatmul.mubr.msk.bf16.vlgmr.msra.gmra.mrb[4].mxu1 %vm367_vm1, %v476_v27 }
 0x2ba   : > { %1104 = vmatpush3.bf16.xpose.msra.mxu1 %v596_v30  ;;  %1105 = vmatprep.mubr.msk.bf16.mxu1 %vm1450_vm0, %v1449_v0 }
 0x2bb   : > { %1115 = vmatprep.subr.bf16.mxu1 %v1449_v0 }
 0x2c1   : > { %1106 = vmatmul.mubr.msk.bf16.vlgmr.msra.gmra.mrb[8].mxu1 %vm367_vm1, %v589_v29 }
 0x2c2   : > { %1116 = vmatpush3.bf16.xpose.msra.mxu1 %v707_v32  ;;  %1117 = vmatprep.mubr.msk.bf16.mxu1 %vm1450_vm0, %v1449_v0 }
 0x2c9   : > { %1118 = vmatmul.mubr.msk.bf16.vlgmr.msra.gmra.mrb[12].mxu1 %vm367_vm1, %v700_v33 }
 0x384   : > { %v1754_v34 = vpop.f32.mrb[0].mxu1 }
 0x385   : > { %v1089_v35 = vpop.f32.mrb[1].mxu1 }
 0x386   : > { %v471_v36 = vpop.f32.mrb[2].mxu1 }
 0x387   : > { %v1090_v37 = vpop.f32.mrb[3].mxu1 }
 0x38c   : > { %v520_v38 = vpop.f32.mrb[4].mxu1 }
 0x38d   : > { %v521_v39 = vadd.f32 %v520_v38, %v1717_v6  ;;  %v1095_v40 = vpop.f32.mrb[5].mxu1 }
 0x38e   : > { %v523_v41 = vpop.f32.mrb[6].mxu1 }
 0x38f   : > { %v1096_v42 = vpop.f32.mrb[7].mxu1  ;;  %v526_v43 = vsel %vm367_vm1, %v521_v39, -inf }
 0x390   : > { %527 = vmax.xlane.f32.xlu1 %v526_v43 }
 0x394   : > { %v632_v44 = vpop.f32.mrb[8].mxu1 }
 0x395   : > { %v633_v45 = vadd.f32 %v632_v44, %v1717_v6  ;;  %v1107_v46 = vpop.f32.mrb[9].mxu1 }
 0x396   : > { %v635_v47 = vpop.f32.mrb[10].mxu1 }
 0x397   : > { %v638_v48 = vsel %vm367_vm1, %v633_v45, -inf  ;;  %v1108_v49 = vpop.f32.mrb[11].mxu1 }
 0x398   : > { %639 = vmax.xlane.f32.xlu0 %v638_v48 }
 0x39c   : > { %v743_v50 = vpop.f32.mrb[12].mxu1 }
 0x39d   : > { %v744_v51 = vadd.f32 %v743_v50, %v1717_v6  ;;  %v1119_v52 = vpop.f32.mrb[13].mxu1 }
 0x39e   : > { %v746_v53 = vpop.f32.mrb[14].mxu1 }
 0x39f   : > { %v749_v54 = vsel %vm367_vm1, %v744_v51, -inf  ;;  %v1120_v55 = vpop.f32.mrb[15].mxu1 }
 0x3a0   : > { %750 = vmax.xlane.f32.xlu1 %v749_v54 }
 0x41d   : > { %v528_v56 = vpop.xlane.xlu1 %527 }
 0x41e   : > { %v529_v57 = vsub.f32 %v521_v39, %v528_v56 }
 0x420   : > { %v530_v58 = vmul.f32 1.442695, %v529_v57 }
 0x422   : > { %1205 = vpow2.f32 %v530_v58 }
 0x425   : > { %v640_v59 = vpop.xlane.xlu0 %639 }
 0x426   : > { %v641_v60 = vsub.f32 %v633_v45, %v640_v59 }
 0x428   : > { %v642_v61 = vmul.f32 1.442695, %v641_v60 }
 0x42a   : > { %1207 = vpow2.f32 %v642_v61 }
 0x42c   : > { %v1206_v62 = vpop.eup %1205 }
 0x42d   : > { %v532_v63 = vsel %vm367_vm1, %v1206_v62, 0.0  ;;  %v751_v3 = vpop.xlane.xlu1 %750 }
 0x42e   : > { %533 = vadd.xlane.f32.xlu1 %v532_v63  ;;  %v752_v4 = vsub.f32 %v744_v51, %v751_v3 }
 0x430   : > { %v753_v5 = vmul.f32 1.442695, %v752_v4 }
 0x432   : > { %1209 = vpow2.f32 %v753_v5 }
 0x434   : > { %v1208_v1 = vpop.eup %1207 }
 0x435   : > { %v644_v2 = vsel %vm367_vm1, %v1208_v1, 0.0 }
 0x436   : > { %645 = vadd.xlane.f32.xlu0 %v644_v2 }
 0x43c   : > { %v1210_v6 = vpop.eup %1209 }
 0x43d   : > { %v755_v7 = vsel %vm367_vm1, %v1210_v6, 0.0 }
 0x43f   : > { %651 = vrot.lane.b32.xlu1 %v1729_v19, %s1452_s1 }
 0x44c   : > { %540 = vrot.lane.b32.xlu0 %v1729_v19, %s1451_s28 }
 0x463   : > { %756 = vadd.xlane.f32.xlu1 %v755_v7 }
 0x474   : > { %762 = vrot.lane.b32.xlu1 %v1729_v19, %s1453_s16 }
 0x4bb   : > { %v534_v8 = vpop.xlane.xlu1 %533 }
 0x4bc   : > { %1211 = vrcp.f32 %v534_v8 }
 0x4bf   : > { %v652_v14 = vpop.permute.xlu1 %651 }
 0x4c0   : > { %v657_v16 = vsel %vm430_vm2, %v652_v14, 0 }
 0x4c3   : > { %v646_v9 = vpop.xlane.xlu0 %645 }
 0x4c4   : > { %1213 = vrcp.f32 %v646_v9 }
 0x4c6   : > { %v1212_v10 = vpop.eup %1211 }
 0x4c7   : > { %v536_v11 = vmul.f32 %v1212_v10, %v1206_v62  ;;  %v541_v12 = vpop.permute.xlu0 %540 }
 0x4c8   : > { %v546_v13 = vsel %vm430_vm2, %v541_v12, 0 }
 0x4c9   : > { %1098 = vmatpush3.bf16.msra.mxu0 %v546_v13  ;;  %v538_v15 = vpack.c.bf16 %v536_v11, %v536_v11  ;;  %v537_v23 = vadd.f32 %v536_v11, %v1735_v24 }
 0x4ca   : > { %1109 = vmatprep.subr.bf16.mxu0 %v1449_v0 }
 0x4cc   : > { %1100 = vmatmul.mubr.msk.bf16.vlgmr.msra.gmra.mrb[4].mxu0 %vm367_vm1, %v538_v15 }
 0x4cd   : > { %1110 = vmatpush3.bf16.msra.mxu0 %v657_v16  ;;  %1111 = vmatprep.mubr.msk.bf16.mxu0 %vm1450_vm0, %v1449_v0 }
 0x4ce   : > { %v1214_v17 = vpop.eup %1213  ;;  %1121 = vmatprep.subr.bf16.mxu0 %v1449_v0 }
 0x4cf   : > { %v648_v18 = vmul.f32 %v1214_v17, %v1208_v1 }
 0x4d1   : > { %v650_v19 = vpack.c.bf16 %v648_v18, %v648_v18  ;;  %v649_v26 = vadd.f32 %v648_v18, %v537_v23 }
 0x4d4   : > { %1112 = vmatmul.mubr.msk.bf16.vlgmr.msra.gmra.mrb[8].mxu0 %vm367_vm1, %v650_v19 }
 0x4d5   : > { %1123 = vmatprep.mubr.msk.bf16.mxu0 %vm1450_vm0, %v1449_v0 }
 0x4f0   : > { %v757_v20 = vpop.xlane.xlu1 %756 }
 0x4f1   : > { %1215 = vrcp.f32 %v757_v20 }
 0x4f4   : > { %v763_v21 = vpop.permute.xlu1 %762 }
 0x4f5   : > { %v768_v22 = vsel %vm430_vm2, %v763_v21, 0 }
 0x4f6   : > { %1122 = vmatpush3.bf16.msra.mxu0 %v768_v22 }
 0x4fb   : > { %v1216_v25 = vpop.eup %1215 }
 0x4fc   : > { %v759_v27 = vmul.f32 %v1216_v25, %v1210_v6 }
 0x4fe   : > { %v760_v28 = vadd.f32 %v759_v27, %v649_v26  ;;  %v761_v29 = vpack.c.bf16 %v759_v27, %v759_v27 }
 0x500   : > { %1124 = vmatmul.mubr.msk.bf16.vlgmr.msra.gmra.mrb[12].mxu0 %vm367_vm1, %v761_v29  ;;  %v829_v30 = vmul.f32 0.25, %v760_v28 }
 0x502   : > { %830 = vst.msk [vmem:[%s358_s13] sm:$0xff] %vm367_vm1, %v829_v30 }
 0x59f   : > { %v582_v0 = vpop.f32.mrb[4].mxu0 }
 0x5a0   : > { %811 = vrot.lane.b32.xlu0 %v582_v0, %s1454_s24  ;;  %v1101_v31 = vpop.f32.mrb[5].mxu0 }
 0x5a1   : > { %v585_v24 = vpop.f32.mrb[6].mxu0 }
 0x5a2   : > { %v1102_v32 = vpop.f32.mrb[7].mxu0 }
 0x5a7   : > { %v693_v33 = vpop.f32.mrb[8].mxu0 }
 0x5a8   : > { %815 = vrot.lane.b32.xlu1 %v693_v33, %s1455_s7  ;;  %v1113_v35 = vpop.f32.mrb[9].mxu0 }
 0x5a9   : > { %v696_v36 = vpop.f32.mrb[10].mxu0 }
 0x5aa   : > { %v1114_v37 = vpop.f32.mrb[11].mxu0 }
 0x5ab   : > { %1350 = shalt.err (!%p1347_p1)
}
 0x5ac   : > { %s1351_s12 = scalar_lea.hbm %s1792_s20, 128  ;;  %s1355_s1 = scalar_lea.hbm %s1869_s5, 256 }
 0x5ad   : > { %p1352_p10 = scmp.ne.s32.totalorder %s1792_s20, %s1351_s12  ;;  %p1356_p9 = scmp.lt.u32.totalorder %s1792_s20, %s1869_s5 }
 0x5ae   : > { %p1357_p5 = scmp.lt.u32.totalorder %s1355_s1, %s1351_s12  ;;  %p1359_p3 = scmp.lt.u32.totalorder %s1351_s12, %s1792_s20 }
 0x5af   : > { %p1353_p4 = pnand %p1352_p10, %p1894_p6 }
 0x5b0   : > { %p1358_p2 = por %p1357_p5, %p1356_p9 }
 0x5b1   : > { %p1354_p7 = pneg %p1353_p4 }
 0x5b2   : > { %p1360_p12 = por %p1359_p3, %p1358_p2 }
 0x5b4   : > { %p1361_p0 = pnand %p1360_p12, %p1354_p7 }
 0x5b6   : > { %1364 = shalt.err (!%p1361_p0)
}
 0x5b7   : > { %1136 = dma.vmem_to_hbm [thread:$0]  (%p1894_p6), %s864_s11, 128, %s1792_s20, %s837_s14   ;;  %vm823_vm3 = vcmask 130048   ;;  %vm825_vm4 = vcmask 195584   ;;  %vm827_vm5 = vcmask 261120  }
 0x5b8   : > { %s1457_s24 = smov 24   ;;  %s351_s7 = scalar_lea.vmem [#allocation10], %s1685_s17 }
 0x5b9   : > { %s850_s8 = sshll.u32 %s351_s7, 4  ;;  %s1820_s11 = scalar_lea.hbm %s1868_s4, %s1059_s6  ;;  %s1822_s8 = int_to_ptr.vmem [resolvable:$true] %s850_s8 }
 0x5ba   : > { %s832_s17 = scalar_lea.sflag [#allocation4], %s1682_s23  ;;  %s1365_s14 = scalar_lea.vmem %s1822_s8, 128 }
 0x5bb   : > { %p1366_p8 = scmp.ne.s32.totalorder %s1822_s8, %s1365_s14  ;;  %s1458_s9 = smov [#allocation10]  }
 0x5bc   : > { %s1369_s22 = sshll.u32 %s1458_s9, 4  ;;  %s1370_s22 = int_to_ptr.vmem [resolvable:$false] %s1369_s22 }
 0x5bd   : > { %p1367_p13 = pnand %p1366_p8, %p1894_p6  ;;  %s1371_s10 = scalar_lea.vmem %s1370_s22, 256 }
 0x5be   : > { %p1372_p1 = scmp.lt.s32.totalorder %s1822_s8, %s1370_s22  ;;  %p1373_p10 = scmp.lt.s32.totalorder %s1371_s10, %s1365_s14 }
 0x5bf   : > { %p1368_p11 = pneg %p1367_p13 }
 0x5c0   : > { %p1374_p4 = por %p1373_p10, %p1372_p1 }
 0x5c2   : > { %p1375_p7 = pnand %p1374_p4, %p1368_p11 }
 0x5d3   : > { %v804_v38 = vpop.f32.mrb[12].mxu0 }
 0x5d4   : > { %819 = vrot.lane.b32.xlu0 %v804_v38, %s1457_s24  ;;  %v1125_v39 = vpop.f32.mrb[13].mxu0 }
 0x5d5   : > { %v807_v40 = vpop.f32.mrb[14].mxu0 }
 0x5d6   : > { %v1126_v41 = vpop.f32.mrb[15].mxu0 }
 0x612   : > { %v812_v42 = vpop.permute.xlu0 %811 }
 0x613   : > { %v822_v44 = vsel %vm367_vm1, %v1754_v34, %v812_v42 }
 0x61a   : > { %v816_v43 = vpop.permute.xlu1 %815 }
 0x61b   : > { %v824_v45 = vsel %vm823_vm3, %v822_v44, %v816_v43 }
 0x646   : > { %v820_v46 = vpop.permute.xlu0 %819 }
 0x647   : > { %v826_v47 = vsel %vm825_vm4, %v824_v45, %v820_v46 }
 0x648   : > { %828 = vst.msk [vmem:[%s351_s7] sm:$0xff] %vm827_vm5, %v826_v47 }
 0x649   : > { %1378 = shalt.err (!%p1375_p7)
}
 0x64a   : > { %s1379_s23 = scalar_lea.hbm %s1820_s11, 128  ;;  %s1383_s26 = scalar_lea.hbm %s1868_s4, 256 }
 0x64b   : > { %p1380_p9 = scmp.ne.s32.totalorder %s1820_s11, %s1379_s23  ;;  %p1384_p3 = scmp.lt.u32.totalorder %s1820_s11, %s1868_s4 }
 0x64c   : > { %p1385_p12 = scmp.lt.u32.totalorder %s1383_s26, %s1379_s23  ;;  %p1387_p8 = scmp.lt.u32.totalorder %s1379_s23, %s1820_s11 }
 0x64d   : > { %p1381_p5 = pnand %p1380_p9, %p1894_p6 }
 0x64e   : > { %p1386_p0 = por %p1385_p12, %p1384_p3 }
 0x64f   : > { %p1382_p2 = pneg %p1381_p5 }
 0x650   : > { %p1388_p13 = por %p1387_p8, %p1386_p0 }
 0x652   : > { %p1389_p11 = pnand %p1388_p13, %p1382_p2 }
 0x654   : > { %1392 = shalt.err (!%p1389_p11)
}
 0x655   : > { %1135 = dma.vmem_to_hbm [thread:$0]  (%p1894_p6), %s1822_s8, 128, %s1820_s11, %s832_s17  }
 0x656 PF: > { %s875_s28 = sand.u32 1, %s1431_s18   ;;  %p1895_p1 = scmp.ne.s32.totalorder %s1883_s30, 0 }
 0x657   : > { %p1896_p10 = scmp.ge.s32.totalorder %s1443_s21, 2  ;;  %s876_s1 = scalar_lea.sflag [#allocation4], %s875_s28 }
 0x659   : > { %p1153_p4 = pnand %p1896_p10, %p1895_p1 }
 0x65b   : > { %1422 = dma.done.wait (!%p1153_p4), %s876_s1, 128  }
 0x65c   : > { %1424 = vsyncadd (!%p1153_p4), %s876_s1, 4294967168  ;;  %s885_s16 = scalar_lea.sflag [#allocation12], %s875_s28 }
 0x65d   : > { %1426 = dma.done.wait (!%p1153_p4), %s885_s16, 128  }
 0x65e   : > { %1428 = vsyncadd (!%p1153_p4), %s885_s16, 4294967168  ;;  %s1897_s21 = sld [smem:[#allocation19_spill]]  ;;  %s1898_s29 = sld [smem:[#allocation18_spill]] }
 0x65f   : > { %s1899_s20 = sld [smem:[#allocation20_spill]]  ;;  %s1900_s18 = smov %s1435_s19 }
 0x664   : > { %p28_p6 = scmp.ge.s32.totalorder %s1897_s21, 4   ;;  %s1901_s19 = smov %s1898_s29 }
 0x666   :  { %30 = sbr.rel (!%p28_p6) target bundleno = 13 (0xd), region = 135 }
 0x66d   :  { %890 = vsyncpa [#allocation3], 1 }
 0x66e   :  { %892 = vsyncpa [#allocation3 + $0x1], 1 }
 0x66f   :  { %893 = vsyncpa [#allocation6], 1 }
 0x670   :  { %895 = vsyncpa [#allocation6 + $0x1], 1 }
 0x671   :  { %896 = vsyncpa [#allocation9], 1 }
 0x672   :  { %898 = vsyncpa [#allocation9 + $0x1], 1 }
 0x673   :  { %899 = vsyncpa [#allocation4], 1 }
 0x674   :  { %901 = vsyncpa [#allocation4 + $0x1], 1 }
 0x675   :  { %902 = vsyncpa [#allocation12], 1 }
 0x676   :  { %904 = vsyncpa [#allocation12 + $0x1], 1 }

</bundles_post_ra>
